<compile_context>
chip_gen: v6e
topology: v6e:2x2x1
jax: 0.10.0
libtpu: 0.0.40
codegen_flags: <defaults>
</compile_context>

<pallas_src>
import numpy as np
import jax
import jax.numpy as jnp
from jax.experimental import pallas as pl
from jax.experimental.pallas import tpu as pltpu


def _orthogonal(key, shape, gain=1.0, dtype=jnp.float32):
    """Deterministic orthogonal init (mimics nn.init.orthogonal_)."""
    rows, cols = shape
    n = max(rows, cols)
    a = jax.random.normal(key, (n, n), dtype=jnp.float32)
    q, r = jnp.linalg.qr(a)
    q = q * jnp.sign(jnp.diag(r))[None, :]
    return (gain * q[:rows, :cols]).astype(dtype)


def _mlp_body(x, w1_ref, w2_ref, aux_ref, out_ref):
    """Shared fused MLP body: x -> lane-dense [Tb, 2H] output slab."""
    w1 = w1_ref[...]                      # [Fin, 2H]   (actor | critic)
    w2 = w2_ref[...]                      # [2H, 2H]    block-diagonal
    aux = aux_ref[...]                    # [4, 2H]
    b1 = aux[0:1, :]                      # fused first-layer bias
    b2 = aux[1:2, :]                      # fused second-layer bias
    wv = aux[2:3, :]                      # critic_linear weight, zero on actor lanes
    bv = aux[3:4, 0:1]                    # critic_linear bias, [1, 1]

    # Fused first layer: one 128-wide MXU push for both branches.
    h1 = jnp.tanh(jnp.dot(x, w1, preferred_element_type=jnp.float32) + b1)
    # Fused second layer: block-diagonal 128x128 -> [actor_h2 | critic_h2].
    h2 = jnp.tanh(jnp.dot(h1, w2, preferred_element_type=jnp.float32) + b2)

    # Value head as VPU multiply + cross-lane reduce (actor lanes masked by zeros
    # in wv) instead of an N=1 MXU matmul.
    value = jnp.sum(h2 * wv, axis=-1, keepdims=True) + bv    # [Tb, 1]

    # Lane-dense [Tb, 2H] output: actor in lanes 0..H-1, value broadcast in the
    # remaining lanes -> one unmasked 128-wide store.
    half = h2.shape[-1] // 2
    lane = jax.lax.broadcasted_iota(jnp.int32, h2.shape, 1)
    out_ref[...] = jnp.where(lane < half, h2, value)


def policy_mlp_kernel(x_ref, w1_ref, w2_ref, aux_ref, out_ref):
    """Plain MLPBase.forward (no observation normalization)."""
    _mlp_body(x_ref[...], w1_ref, w2_ref, aux_ref, out_ref)


def policy_act_kernel(x_ref, norm_ref, w1_ref, w2_ref, aux_ref, out_ref):
    """Policy.act hot path: fused obs_rms normalization + clip + MLPBase.forward."""
    mean = norm_ref[0:1, :]               # [1, Fin]
    inv_std = norm_ref[1:2, :]            # [1, Fin] = 1/sqrt(var + 1e-8)
    x = jnp.clip((x_ref[...] - mean) * inv_std, -10.0, 10.0)
    _mlp_body(x, w1_ref, w2_ref, aux_ref, out_ref)


def policy_forward(x, packed, *, norm=None, tile_b=1024):
    """x: [B, num_inputs] float32.

    If `norm` is None: exact MLPBase.forward.
    If `norm` is a [2, num_inputs] array (row0=mean, row1=1/sqrt(var+1e-8)):
    the Policy.act input normalization/clipping is fused in front of the MLP.

    Returns (value [B,1], hidden_actor [B,H]).
    """
    B, fin = x.shape
    h2dim = packed["w1"].shape[1]          # 2*hidden
    hidden = h2dim // 2

    if B > tile_b:
        n_tiles = -(-B // tile_b)
        bp = n_tiles * tile_b
        if bp != B:
            x = jnp.pad(x, ((0, bp - B), (0, 0)))
        blk_b = tile_b
    else:
        bp = B
        n_tiles = 1
        blk_b = B                          # block == full array dims -> always legal

    weight_specs = [
        pl.BlockSpec(packed["w1"].shape, lambda i: (0, 0)),
        pl.BlockSpec(packed["w2"].shape, lambda i: (0, 0)),
        pl.BlockSpec(packed["aux"].shape, lambda i: (0, 0)),
    ]
    x_spec = pl.BlockSpec((blk_b, fin), lambda i: (i, 0))
    out_spec = pl.BlockSpec((blk_b, h2dim), lambda i: (i, 0))

    if norm is None:
        kernel = policy_mlp_kernel
        in_specs = [x_spec] + weight_specs
        args = (x, packed["w1"], packed["w2"], packed["aux"])
    else:
        kernel = policy_act_kernel
        in_specs = [x_spec, pl.BlockSpec(norm.shape, lambda i: (0, 0))] + weight_specs
        args = (x, norm, packed["w1"], packed["w2"], packed["aux"])

    out = pl.pallas_call(
        kernel,
        out_shape=jax.ShapeDtypeStruct((bp, h2dim), jnp.float32),
        grid=(n_tiles,),
        in_specs=in_specs,
        out_specs=out_spec,
        compiler_params=pltpu.CompilerParams(
            dimension_semantics=("parallel",)),
    )(*args)

    actor = out[:B, :hidden]
    value = out[:B, hidden:hidden + 1]
    return value, actor


def make_params(num_inputs, hidden_size=64):
    """Per-layer params: orthogonal(gain=sqrt(2)) weights, zero biases,
    matching MLPBase.__init__ (init_ applied to all three heads)."""
    keys = jax.random.split(jax.random.PRNGKey(42), 5)
    g = float(np.sqrt(2.0))
    return {
        "w1a": _orthogonal(keys[0], (num_inputs, hidden_size), gain=g),
        "b1a": jnp.zeros((1, hidden_size), jnp.float32),
        "w2a": _orthogonal(keys[1], (hidden_size, hidden_size), gain=g),
        "b2a": jnp.zeros((1, hidden_size), jnp.float32),
        "w1c": _orthogonal(keys[2], (num_inputs, hidden_size), gain=g),
        "b1c": jnp.zeros((1, hidden_size), jnp.float32),
        "w2c": _orthogonal(keys[3], (hidden_size, hidden_size), gain=g),
        "b2c": jnp.zeros((1, hidden_size), jnp.float32),
        "wv":  _orthogonal(keys[4], (hidden_size, 1), gain=g),
        "bv":  jnp.zeros((1, 1), jnp.float32),
    }


def pack_params(p):
    """Pack per-layer params into the 3 fused kernel arrays."""
    H = p["w2a"].shape[0]
    # Fused first layer: [Fin, 2H] with actor in cols 0..H-1, critic in H..2H-1.
    w1 = jnp.concatenate([p["w1a"], p["w1c"]], axis=1)
    # Fused second layer: block-diagonal [2H, 2H].
    w2 = jnp.zeros((2 * H, 2 * H), jnp.float32)
    w2 = w2.at[:H, :H].set(p["w2a"]).at[H:, H:].set(p["w2c"])
    b1 = jnp.concatenate([p["b1a"], p["b1c"]], axis=1)
    b2 = jnp.concatenate([p["b2a"], p["b2c"]], axis=1)
    # Value-head row: zeros over actor lanes, critic_linear weight over critic lanes.
    wv_row = jnp.concatenate([jnp.zeros((1, H), jnp.float32), p["wv"].T], axis=1)
    bv_row = jnp.zeros((1, 2 * H), jnp.float32).at[0, 0].set(p["bv"][0, 0])
    aux = jnp.concatenate([b1, b2, wv_row, bv_row], axis=0)   # [4, 2H]
    return {"w1": w1, "w2": w2, "aux": aux}


def make_norm(mean, var, eps=1e-8):
    """Pack obs_rms statistics into the [2, Fin] norm array used by the act kernel."""
    inv_std = 1.0 / jnp.sqrt(var + eps)
    return jnp.stack([mean, inv_std], axis=0).astype(jnp.float32)


def reference_forward(x, p):
    h1c = jnp.tanh(x @ p["w1c"] + p["b1c"])
    h2c = jnp.tanh(h1c @ p["w2c"] + p["b2c"])
    value = h2c @ p["wv"] + p["bv"]
    h1a = jnp.tanh(x @ p["w1a"] + p["b1a"])
    actor = jnp.tanh(h1a @ p["w2a"] + p["b2a"])
    return value, actor


def reference_act(x, p, mean, var, eps=1e-8):
    xn = jnp.clip((x - mean) / jnp.sqrt(var + eps), -10.0, 10.0)
    return reference_forward(xn, p)


if __name__ == "__main__":
    NUM_INPUTS, HIDDEN = 32, 64
    params = make_params(NUM_INPUTS, HIDDEN)
    packed = pack_params(params)

    # --- small-batch base forward (single grid step) ---
    B = 8
    key = jax.random.PRNGKey(0)
    x = jax.random.normal(key, (B, NUM_INPUTS), dtype=jnp.float32)
    value, actor = policy_forward(x, packed)
    value = jax.block_until_ready(value)
    actor = jax.block_until_ready(actor)
    v_ref, a_ref = reference_forward(x, params)
    assert value.shape == (B, 1) and actor.shape == (B, HIDDEN)
    np.testing.assert_allclose(np.asarray(value), np.asarray(v_ref),
                               rtol=1e-5, atol=1e-5)
    np.testing.assert_allclose(np.asarray(actor), np.asarray(a_ref),
                               rtol=1e-5, atol=1e-5)

    # --- Policy.act path: fused obs normalization + clip ---
    kmean, kvar = jax.random.split(jax.random.PRNGKey(7))
    obs_mean = jax.random.normal(kmean, (NUM_INPUTS,), dtype=jnp.float32)
    obs_var = jnp.abs(jax.random.normal(kvar, (NUM_INPUTS,), dtype=jnp.float32)) + 0.5
    norm = make_norm(obs_mean, obs_var)
    value_n, actor_n = policy_forward(x, packed, norm=norm)
    value_n = jax.block_until_ready(value_n)
    actor_n = jax.block_until_ready(actor_n)
    v_ref_n, a_ref_n = reference_act(x, params, obs_mean, obs_var)
    np.testing.assert_allclose(np.asarray(value_n), np.asarray(v_ref_n),
                               rtol=1e-5, atol=1e-5)
    np.testing.assert_allclose(np.asarray(actor_n), np.asarray(a_ref_n),
                               rtol=1e-5, atol=1e-5)

    # --- large rollout batch: batch tiling + padding, grid shards across TCs ---
    B2 = 2000
    x2 = jax.random.normal(jax.random.PRNGKey(1), (B2, NUM_INPUTS),
                           dtype=jnp.float32)
    value2, actor2 = policy_forward(x2, packed, tile_b=1024)
    value2 = jax.block_until_ready(value2)
    actor2 = jax.block_until_ready(actor2)
    v_ref2, a_ref2 = reference_forward(x2, params)
    assert value2.shape == (B2, 1) and actor2.shape == (B2, HIDDEN)
    np.testing.assert_allclose(np.asarray(value2), np.asarray(v_ref2),
                               rtol=1e-5, atol=1e-5)
    np.testing.assert_allclose(np.asarray(actor2), np.asarray(a_ref2),
                               rtol=1e-5, atol=1e-5)

    print("KERNEL_OK")
</pallas_src>

<mosaic_0001>
module attributes {stable_mosaic.version = 11 : i64} {
  func.func @policy_mlp_kernel(%arg0: i32, %arg1: memref<8x32xf32, #tpu.memory_space<vmem>>, %arg2: memref<32x128xf32, #tpu.memory_space<vmem>>, %arg3: memref<128x128xf32, #tpu.memory_space<vmem>>, %arg4: memref<4x128xf32, #tpu.memory_space<vmem>>, %arg5: memref<8x128xf32, #tpu.memory_space<vmem>>) attributes {dimension_semantics = [#tpu.dimension_semantics<parallel>], iteration_bounds = array<i64: 1>, scalar_prefetch = 0 : i64, scratch_operands = 0 : i64, tpu.core_type = #tpu.core_type<tc>, window_params = [{transform_indices = @transform_0, window_bounds = array<i64: 8, 32>}, {pipeline_mode = #tpu.pipeline_mode<synchronous>, transform_indices = @transform_1, window_bounds = array<i64: 32, 128>}, {pipeline_mode = #tpu.pipeline_mode<synchronous>, transform_indices = @transform_2, window_bounds = array<i64: 128, 128>}, {pipeline_mode = #tpu.pipeline_mode<synchronous>, transform_indices = @transform_3, window_bounds = array<i64: 4, 128>}, {transform_indices = @transform_4, window_bounds = array<i64: 8, 128>}]} {
    %c0 = arith.constant 0 : index
    %c0_0 = arith.constant 0 : index
    %0 = vector.load %arg1[%c0, %c0_0] : memref<8x32xf32, #tpu.memory_space<vmem>>, vector<8x32xf32>
    %c0_1 = arith.constant 0 : index
    %c0_2 = arith.constant 0 : index
    %1 = vector.load %arg2[%c0_1, %c0_2] : memref<32x128xf32, #tpu.memory_space<vmem>>, vector<32x128xf32>
    %c0_3 = arith.constant 0 : index
    %c0_4 = arith.constant 0 : index
    %2 = vector.load %arg3[%c0_3, %c0_4] : memref<128x128xf32, #tpu.memory_space<vmem>>, vector<128x128xf32>
    %c0_5 = arith.constant 0 : index
    %c0_6 = arith.constant 0 : index
    %3 = vector.load %arg4[%c0_5, %c0_6] : memref<4x128xf32, #tpu.memory_space<vmem>>, vector<4x128xf32>
    %4 = vector.extract_strided_slice %3 {offsets = [0, 0], sizes = [1, 128], strides = [1, 1]} : vector<4x128xf32> to vector<1x128xf32>
    %5 = vector.extract_strided_slice %3 {offsets = [1, 0], sizes = [1, 128], strides = [1, 1]} : vector<4x128xf32> to vector<1x128xf32>
    %6 = vector.extract_strided_slice %3 {offsets = [2, 0], sizes = [1, 128], strides = [1, 1]} : vector<4x128xf32> to vector<1x128xf32>
    %7 = vector.extract_strided_slice %3 {offsets = [3, 0], sizes = [1, 1], strides = [1, 1]} : vector<4x128xf32> to vector<1x1xf32>
    %cst = arith.constant dense<0.000000e+00> : vector<8x128xf32>
    %8 = tpu.matmul %0, %1, %cst {dimension_numbers = #tpu.dot_dimension_numbers<[1], [0], [0], [1], [0, 0, 1, 1], [], []>} : vector<8x32xf32>, vector<32x128xf32>, vector<8x128xf32> -> vector<8x128xf32>
    %9 = vector.broadcast %4 : vector<1x128xf32> to vector<8x128xf32>
    %10 = arith.addf %8, %9 : vector<8x128xf32>
    %11 = math.tanh %10 : vector<8x128xf32>
    %cst_7 = arith.constant dense<0.000000e+00> : vector<8x128xf32>
    %12 = tpu.matmul %11, %2, %cst_7 {dimension_numbers = #tpu.dot_dimension_numbers<[1], [0], [0], [1], [0, 0, 1, 1], [], []>} : vector<8x128xf32>, vector<128x128xf32>, vector<8x128xf32> -> vector<8x128xf32>
    %13 = vector.broadcast %5 : vector<1x128xf32> to vector<8x128xf32>
    %14 = arith.addf %12, %13 : vector<8x128xf32>
    %15 = math.tanh %14 : vector<8x128xf32>
    %16 = vector.broadcast %6 : vector<1x128xf32> to vector<8x128xf32>
    %17 = arith.mulf %15, %16 : vector<8x128xf32>
    %cst_8 = arith.constant dense<0.000000e+00> : vector<8xf32>
    %18 = vector.multi_reduction <add>, %17, %cst_8 [1] : vector<8x128xf32> to vector<8xf32>
    %19 = vector.shape_cast %18 : vector<8xf32> to vector<8x1xf32>
    %20 = vector.broadcast %7 : vector<1x1xf32> to vector<8x1xf32>
    %21 = arith.addf %19, %20 : vector<8x1xf32>
    %22 = tpu.iota {dimensions = array<i32: 1>} : vector<8x128xi32>
    %c64_i32 = arith.constant 64 : i32
    %23 = vector.broadcast %c64_i32 : i32 to vector<8x128xi32>
    %24 = arith.cmpi slt, %22, %23 : vector<8x128xi32>
    %25 = vector.shape_cast %21 : vector<8x1xf32> to vector<8x1xf32>
    %26 = vector.broadcast %25 : vector<8x1xf32> to vector<8x128xf32>
    %27 = arith.select %24, %15, %26 : vector<8x128xi1>, vector<8x128xf32>
    %c0_9 = arith.constant 0 : index
    %c0_10 = arith.constant 0 : index
    %28 = vector.load %arg5[%c0_9, %c0_10] : memref<8x128xf32, #tpu.memory_space<vmem>>, vector<8x128xf32>
    tpu.vector_store %arg5[%c0_9, %c0_10], %27 {strides = array<i32>} : memref<8x128xf32, #tpu.memory_space<vmem>>, vector<8x128xf32>,
    return
  }
  func.func @transform_0(%arg0: i32) -> (i32, i32) {
    %c0_i32 = arith.constant 0 : i32
    %c0_i32_0 = arith.constant 0 : i32
    return %arg0, %c0_i32 : i32, i32
  }
  func.func @transform_1(%arg0: i32) -> (i32, i32) {
    %c0_i32 = arith.constant 0 : i32
    %c0_i32_0 = arith.constant 0 : i32
    %c0_i32_1 = arith.constant 0 : i32
    return %c0_i32, %c0_i32_0 : i32, i32
  }
  func.func @transform_2(%arg0: i32) -> (i32, i32) {
    %c0_i32 = arith.constant 0 : i32
    %c0_i32_0 = arith.constant 0 : i32
    %c0_i32_1 = arith.constant 0 : i32
    return %c0_i32, %c0_i32_0 : i32, i32
  }
  func.func @transform_3(%arg0: i32) -> (i32, i32) {
    %c0_i32 = arith.constant 0 : i32
    %c0_i32_0 = arith.constant 0 : i32
    %c0_i32_1 = arith.constant 0 : i32
    return %c0_i32, %c0_i32_0 : i32, i32
  }
  func.func @transform_4(%arg0: i32) -> (i32, i32) {
    %c0_i32 = arith.constant 0 : i32
    %c0_i32_0 = arith.constant 0 : i32
    return %arg0, %c0_i32 : i32, i32
  }
}

</mosaic_0001>

<bundles_post_ra>
// kernel: tpu_custom_call.1
= control target key start
LH: loop header
LB: loop body
LE: loop exit
PB: predicated region body
PF: predicated region fallthrough
CT: control target
= control target key end

     0   :  { %9 = vsyncpa [#allocation3], 0  ;;  %s511_s0 = inlined_call_operand.hbm [shape: f32[8,32], index: 0, kind: input, shape index: {}]   ;;  %s512_s1 = inlined_call_operand.hbm [shape: f32[32,128], index: 1, kind: input, shape index: {}]   ;;  %s513_s2 = inlined_call_operand.hbm [shape: f32[128,128], index: 2, kind: input, shape index: {}]   ;;  %s514_s3 = inlined_call_operand.vmem [shape: f32[4,128], index: 3, kind: input, shape index: {}]   ;;  %s515_s4 = inlined_call_operand.hbm [shape: f32[8,128], index: 4, kind: output, shape index: {}]  }
   0x1   :  { %10 = vsyncpa [#allocation6], 0 }
   0x2   :  { %11 = vsyncpa [#allocation4], 0  ;;  %s440_s15 = smov [#allocation5]  }
   0x3   :  { %s27_s16 = sshll.u32 %s440_s15, 4  ;;  %s28_s16 = int_to_ptr.vmem [resolvable:$true] %s27_s16 }
   0x4   :  { %s362_s17 = scalar_lea.vmem %s28_s16, 512  ;;  %p367_p1 = scmp.lt.s32.totalorder %s28_s16, %s28_s16 }
   0x5   :  { %p363_p0 = scmp.ne.s32.totalorder %s28_s16, %s362_s17  ;;  %p368_p2 = scmp.lt.s32.totalorder %s362_s17, %s362_s17 }
   0x7   :  { %p369_p3 = por %p368_p2, %p367_p1 }
   0x9   :  { %p370_p4 = pnand %p369_p3, %p363_p0 }
   0xb   :  { %373 = shalt.err (!%p370_p4)
}
   0xc   :  { %s441_s18 = smov 128   ;;  %s442_s19 = smov 8  }
   0xd   :  { %33 = dma.hbm_to_vmem [thread:$0]  %s512_s1, 512, %s28_s16, [#allocation6], %s441_s18, %s441_s18, %s442_s19  }
   0xe   :  { %s443_s22 = smov [#allocation2]   ;;  %s444_s24 = smov [#allocation7]  }
   0xf   :  { %s18_s23 = sshll.u32 %s443_s22, 4  ;;  %s39_s25 = sshll.u32 %s444_s24, 4  ;;  %s19_s23 = int_to_ptr.vmem [resolvable:$true] %s18_s23  ;;  %s40_s25 = int_to_ptr.vmem [resolvable:$true] %s39_s25 }
  0x10   :  { %s382_s26 = scalar_lea.vmem %s19_s23, 128  ;;  %p387_p6 = scmp.lt.s32.totalorder %s19_s23, %s19_s23 }
  0x11   :  { %p383_p5 = scmp.ne.s32.totalorder %s19_s23, %s382_s26  ;;  %p388_p7 = scmp.lt.s32.totalorder %s382_s26, %s382_s26 }
  0x13   :  { %p389_p8 = por %p388_p7, %p387_p6 }
  0x15   :  { %p390_p9 = pnand %p389_p8, %p383_p5 }
  0x17   :  { %393 = shalt.err (!%p390_p9)
}
  0x18   :  { %21 = dma.hbm_to_vmem [thread:$0]  %s511_s0, 128, %s19_s23, [#allocation3]  }
  0x19   :  { %s402_s29 = scalar_lea.vmem %s40_s25, 2048  ;;  %p407_p11 = scmp.lt.s32.totalorder %s40_s25, %s40_s25 }
  0x1a   :  { %p403_p10 = scmp.ne.s32.totalorder %s40_s25, %s402_s29  ;;  %p408_p12 = scmp.lt.s32.totalorder %s402_s29, %s402_s29 }
  0x1c   :  { %p409_p13 = por %p408_p12, %p407_p11 }
  0x1e   :  { %p410_p0 = pnand %p409_p13, %p403_p10 }
  0x20   :  { %413 = shalt.err (!%p410_p0)
}
  0x21   :  { %45 = dma.hbm_to_vmem [thread:$0]  %s513_s2, 2048, %s40_s25, [#allocation6], %s441_s18, %s441_s18, %s442_s19  }
  0x22   :  { %434 = dma.done.wait [#allocation3], 128  }
  0x23   :  { %435 = vsyncadd [#allocation3], 4294967168 }
  0x24   :  { %436 = dma.done.wait [#allocation6], 2560  }
  0x25   :  { %437 = vsyncadd [#allocation6], 4294964736  ;;  %v445_v0 = vmov 0.0   ;;  %vm446_vm0 = vmmov 0   ;;  %v61_v1 = vld [vmem:[#allocation5 + $0x18] sm:$0xff]  ;;  %v60_v2 = vld [vmem:[#allocation5 + $0x10] sm:$0xff]  ;;  %v79_v22 = vlaneseq }
  0x26   :  { %294 = vmatprep.subr.mxu0 %v445_v0  ;;  %302 = vmatprep.mubr.msk.f32.mxu0 %vm446_vm0, %v445_v0  ;;  %v77_v3 = vld [vmem:[#allocation7 + $0x78] sm:$0xff]  ;;  %v59_v4 = vld [vmem:[#allocation5 + $0x8] sm:$0xff]  ;;  %v76_v5 = vld [vmem:[#allocation7 + $0x70] sm:$0xff]  ;;  %vm83_vm1 = vcmask 261120   ;;  %v447_v40 = vmov 0  }
  0x27   :  { %305 = vmatprep.subr.mxu1 %v445_v0  ;;  %337 = vmatprep.mubr.msk.f32.mxu1 %vm446_vm0, %v445_v0  ;;  %v75_v6 = vld [vmem:[#allocation7 + $0x68] sm:$0xff]  ;;  %v58_v7 = vld [vmem:[#allocation5] sm:$0xff]  ;;  %v57_v8 = vld [vmem:[#allocation2] sm:$0xff]  ;;  %v80_v23 = vshrl.u32 %v79_v22, 7  ;;  %v246_v45 = vand.u32 127, %v79_v22 }
  0x28   :  { %295 = vmatpush3.msra.mxu0 %v61_v1  ;;  %306 = vmatpush3.msra.mxu1 %v77_v3  ;;  %v74_v9 = vld [vmem:[#allocation7 + $0x60] sm:$0xff]  ;;  %v73_v10 = vld [vmem:[#allocation7 + $0x58] sm:$0xff]  ;;  %v72_v11 = vld [vmem:[#allocation7 + $0x50] sm:$0xff] }
  0x29   :  { %296 = vmatprep.subr.mxu0 %v445_v0  ;;  %307 = vmatprep.subr.mxu1 %v445_v0  ;;  %v71_v12 = vld [vmem:[#allocation7 + $0x48] sm:$0xff]  ;;  %v70_v13 = vld [vmem:[#allocation7 + $0x40] sm:$0xff]  ;;  %v69_v14 = vld [vmem:[#allocation7 + $0x38] sm:$0xff]  ;;  %v81_v24 = vsub.s32 0, %v80_v23  ;;  %v160_v31 = vsub.s32 1, %v80_v23  ;;  %v235_v36 = vsub.s32 2, %v80_v23 }
  0x2a   :  { %297 = vmatpush3.msra.mxu0 %v60_v2  ;;  %308 = vmatpush3.msra.mxu1 %v76_v5  ;;  %v68_v15 = vld [vmem:[#allocation7 + $0x30] sm:$0xff]  ;;  %v67_v16 = vld [vmem:[#allocation7 + $0x28] sm:$0xff]  ;;  %v66_v17 = vld [vmem:[#allocation7 + $0x20] sm:$0xff]  ;;  %v242_v41 = vsub.s32 3, %v80_v23  ;;  %vm247_vm2 = vcmp.lt.s32.totalorder %v246_v45, 64 }
  0x2b   :  { %298 = vmatprep.subr.mxu0 %v445_v0  ;;  %309 = vmatprep.subr.mxu1 %v445_v0  ;;  %v65_v18 = vld [vmem:[#allocation7 + $0x18] sm:$0xff]  ;;  %v64_v19 = vld [vmem:[#allocation7 + $0x10] sm:$0xff]  ;;  %v63_v20 = vld [vmem:[#allocation7 + $0x8] sm:$0xff] }
  0x2c   :  { %299 = vmatpush3.msra.mxu0 %v59_v4  ;;  %310 = vmatpush3.msra.mxu1 %v75_v6  ;;  %v62_v21 = vld [vmem:[#allocation7] sm:$0xff]  ;;  %v78_v25 = vld [vmem:[%s514_s3] sm:$0xf]  ;;  %s448_s3 = smov [#allocation8]  }
  0x2d   :  { %300 = vmatprep.subr.mxu0 %v445_v0  ;;  %311 = vmatprep.subr.mxu1 %v445_v0  ;;  %v82_v26 = vrot.slane %v78_v25, %v81_v24  ;;  %v161_v32 = vrot.slane %v78_v25, %v160_v31  ;;  %v236_v37 = vrot.slane %v78_v25, %v235_v36  ;;  %s261_s5 = sshll.u32 %s448_s3, 4  ;;  %s262_s5 = int_to_ptr.vmem [resolvable:$true] %s261_s5 }
  0x2e   :  { %301 = vmatpush3.msra.mxu0 %v58_v7  ;;  %312 = vmatpush3.msra.mxu1 %v74_v9  ;;  %v243_v42 = vrot.slane %v78_v25, %v242_v41  ;;  %s414_s6 = scalar_lea.vmem %s262_s5, 128  ;;  %p419_p2 = scmp.lt.s32.totalorder %s262_s5, %s262_s5 }
  0x2f   :  { %303 = vmatmul.mubr.msk.f32.vlgmr.msra.gmra.mxu0 %vm83_vm1, %v57_v8  ;;  %313 = vmatprep.subr.mxu1 %v445_v0  ;;  %p415_p1 = scmp.ne.s32.totalorder %s262_s5, %s414_s6  ;;  %p420_p3 = scmp.lt.s32.totalorder %s414_s6, %s414_s6 }
  0x30   :  { %314 = vmatpush3.msra.mxu1 %v73_v10  ;;  %349 = vset.pattern.permute.xlu0 %v447_v40 }
  0x31   :  { %315 = vmatprep.subr.mxu1 %v445_v0  ;;  %p421_p4 = por %p420_p3, %p419_p2 }
  0x32   :  { %316 = vmatpush3.msra.mxu1 %v72_v11 }
  0x33   :  { %317 = vmatprep.subr.mxu1 %v445_v0  ;;  %p422_p5 = pnand %p421_p4, %p415_p1 }
  0x34   :  { %318 = vmatpush3.msra.mxu1 %v71_v12 }
  0x35   :  { %319 = vmatprep.subr.mxu1 %v445_v0 }
  0x36   :  { %320 = vmatpush3.msra.mxu1 %v70_v13 }
  0x37   :  { %321 = vmatprep.subr.mxu1 %v445_v0 }
  0x38   :  { %322 = vmatpush3.msra.mxu1 %v69_v14 }
  0x39   :  { %323 = vmatprep.subr.mxu1 %v445_v0 }
  0x3a   :  { %324 = vmatpush3.msra.mxu1 %v68_v15 }
  0x3b   :  { %325 = vmatprep.subr.mxu1 %v445_v0 }
  0x3c   :  { %326 = vmatpush3.msra.mxu1 %v67_v16 }
  0x3d   :  { %327 = vmatprep.subr.mxu1 %v445_v0 }
  0x3e   :  { %328 = vmatpush3.msra.mxu1 %v66_v17 }
  0x3f   :  { %329 = vmatprep.subr.mxu1 %v445_v0 }
  0x40   :  { %330 = vmatpush3.msra.mxu1 %v65_v18 }
  0x41   :  { %331 = vmatprep.subr.mxu1 %v445_v0 }
  0x42   :  { %332 = vmatpush3.msra.mxu1 %v64_v19 }
  0x43   :  { %333 = vmatprep.subr.mxu1 %v445_v0 }
  0x44   :  { %334 = vmatpush3.msra.mxu1 %v63_v20 }
  0x45   :  { %335 = vmatprep.subr.mxu1 %v445_v0 }
  0x46   :  { %336 = vmatpush3.msra.mxu1 %v62_v21 }
  0xef   :  { %v153_v27 = vpop.f32.mrf.mxu0 }
  0xf0   :  { %v154_v28 = vadd.f32 %v153_v27, %v82_v26 }
  0xf1   :  { %v304_v29 = vpop.f32.mrf.mxu0 }
  0xf2   :  { %350 = vtanh.f32 %v154_v28 }
  0xff   :  { %v351_v30 = vpop.eup %350 }
 0x100   :  { %338 = vmatmul.mubr.f32.vlgmr.msra.gmra.mxu1 %v351_v30 }
 0x1c0   :  { %v228_v33 = vpop.f32.mrf.mxu1 }
 0x1c1   :  { %v229_v34 = vadd.f32 %v228_v33, %v161_v32 }
 0x1c2   :  { %v339_v35 = vpop.f32.mrf.mxu1 }
 0x1c3   :  { %352 = vtanh.f32 %v229_v34 }
 0x1d0   :  { %v353_v38 = vpop.eup %352 }
 0x1d1   :  { %v237_v39 = vmul.f32 %v353_v38, %v236_v37 }
 0x1d3   :  { %238 = vadd.xlane.f32.xlu0 %v237_v39 }
 0x25c   :  { %v239_v43 = vpop.xlane.xlu0 %238 }
 0x25d   :  { %v244_v44 = vadd.f32 %v243_v42, %v239_v43 }
 0x25f   :  { %250 = vperm.xlu0 %349, %v244_v44  }
 0x2da   :  { %v251_v46 = vpop.permute.xlu0 %250 }
 0x2db   :  { %v253_v47 = vsel %vm247_vm2, %v353_v38, %v251_v46 }
 0x2dc   :  { %254 = vst [vmem:[#allocation8] sm:$0xff] %v253_v47 }
 0x2dd   :  { %425 = shalt.err (!%p422_p5)
}
 0x2de   :  { %264 = dma.vmem_to_hbm [thread:$0]  %s262_s5, 128, %s515_s4, [#allocation4]  }
 0x2df   :  { %438 = dma.done.wait [#allocation4], 128  }
 0x2e0   :  { %439 = vsyncadd [#allocation4], 4294967168 }
 0x2e1   :  { %268 = vsyncpa [#allocation3], 1 }
 0x2e2   :  { %269 = vsyncpa [#allocation6], 1 }
 0x2e3   :  { %270 = vsyncpa [#allocation4], 1 }

</bundles_post_ra>
